<compile_context>
chip_gen: v7x
topology: tpu7x:2x2x1
jax: 0.10.0
libtpu: 0.0.40
codegen_flags: <defaults>
</compile_context>

<pallas_src>
import jax
import jax.numpy as jnp
from jax.experimental import pallas as pl
from jax.experimental.pallas import tpu as pltpu


def mlp_kernel(x_ref, w1_ref, b1_ref, w2_ref, b2_ref, w3_ref, b3_ref, o_ref):
    x = x_ref[...]        # (3, TB)   batch on lanes
    w1 = w1_ref[...]      # (50, 3)

    # Layer 1 on the VPU: K=3 contraction as 3 broadcast FMAs + bias, then ReLU.
    h1 = (w1[:, 0:1] * x[0:1, :]
          + w1[:, 1:2] * x[1:2, :]
          + w1[:, 2:3] * x[2:3, :]
          + b1_ref[...])                                  # (50, TB)
    h1 = jnp.maximum(h1, 0.0)

    # Layer 2 on the MXU: (30, 50) @ (50, TB), f32 accumulation.
    h2 = jnp.dot(w2_ref[...], h1, preferred_element_type=jnp.float32)
    h2 = jnp.maximum(h2 + b2_ref[...], 0.0)               # (30, TB)

    # Layer 3 (N=1) on VPU + XLU: elementwise multiply + cross-sublane reduce.
    out = jnp.sum(h2 * w3_ref[...], axis=0, keepdims=True) + b3_ref[...]  # (1, TB)
    o_ref[...] = out.astype(o_ref.dtype)


def network_forward(x, params, tb=512):
    """x: (B, 3) float32 -> (B, 1) float32."""
    w1, b1, w2, b2, w3, b3 = params
    B = x.shape[0]

    # Lane-aligned batch tile; clamp for small batches so we don't over-pad.
    tb = min(tb, max(128, ((B + 127) // 128) * 128))
    n_tiles = pl.cdiv(B, tb)
    B_pad = n_tiles * tb

    # Batch on lanes: transpose and zero-pad to a multiple of the tile size.
    x_t = x.T.astype(jnp.float32)                         # (3, B)
    if B_pad != B:
        x_t = jnp.pad(x_t, ((0, 0), (0, B_pad - B)))

    # Weights/biases: full-array blocks, constant index_map -> resident in VMEM.
    const = lambda a: pl.BlockSpec(a.shape, lambda i: (0,) * a.ndim)

    out = pl.pallas_call(
        mlp_kernel,
        out_shape=jax.ShapeDtypeStruct((1, B_pad), jnp.float32),
        grid=(n_tiles,),
        in_specs=[
            pl.BlockSpec((3, tb), lambda i: (0, i)),      # x tile, lane-dense
            const(w1), const(b1), const(w2), const(b2), const(w3), const(b3),
        ],
        out_specs=pl.BlockSpec((1, tb), lambda i: (0, i)),  # lane-dense output row
        compiler_params=pltpu.CompilerParams(
            dimension_semantics=("parallel",)),
    )(x_t, w1, b1, w2, b2, w3, b3)

    return out[0, :B].reshape(B, 1)


def init_params(key):
    """Deterministic init mirroring PyTorch nn.Linear shapes.

    Stored layout (chosen for the transposed, batch-on-lanes kernel):
      w1: (50, 3)   b1: (50, 1)
      w2: (30, 50)  b2: (30, 1)
      w3: (30, 1)   b3: (1, 1)
    """
    k1, k2, k3, k4, k5, k6 = jax.random.split(key, 6)

    def linear(kw, kb, fan_in, fan_out):
        bound = 1.0 / jnp.sqrt(fan_in)
        w = jax.random.uniform(kw, (fan_out, fan_in), jnp.float32, -bound, bound)
        b = jax.random.uniform(kb, (fan_out, 1), jnp.float32, -bound, bound)
        return w, b

    w1, b1 = linear(k1, k2, 3, 50)
    w2, b2 = linear(k3, k4, 50, 30)
    w3, b3 = linear(k5, k6, 30, 1)
    return (w1, b1, w2, b2, w3.T, b3)   # w3 stored as (30, 1)


def reference_forward(x, params):
    w1, b1, w2, b2, w3, b3 = params
    h1 = jnp.maximum(x @ w1.T + b1.T, 0.0)
    h2 = jnp.maximum(h1 @ w2.T + b2.T, 0.0)
    return h2 @ w3 + b3


if __name__ == "__main__":
    key = jax.random.PRNGKey(0)
    kx, kx2, kp = jax.random.split(key, 3)
    params = init_params(kp)

    # Small-batch check (B=8): single tile, padded to one lane-aligned block.
    B = 8
    x = jax.random.normal(kx, (B, 3), jnp.float32)
    out = jax.block_until_ready(network_forward(x, params))
    ref = reference_forward(x, params)
    assert out.shape == (B, 1), out.shape
    assert jnp.allclose(out, ref, atol=1e-4, rtol=1e-4), (out, ref)

    # Multi-tile check (B=1000 -> 2 grid steps of TB=512) to exercise the grid.
    B2 = 1000
    x2 = jax.random.normal(kx2, (B2, 3), jnp.float32)
    out2 = jax.block_until_ready(network_forward(x2, params))
    ref2 = reference_forward(x2, params)
    assert out2.shape == (B2, 1), out2.shape
    assert jnp.allclose(out2, ref2, atol=1e-4, rtol=1e-4)

    print("KERNEL_OK")
</pallas_src>

<mosaic_0001>
module attributes {stable_mosaic.version = 11 : i64} {
  func.func @mlp_kernel(%arg0: i32, %arg1: memref<3x128xf32, #tpu.memory_space<vmem>>, %arg2: memref<50x3xf32, #tpu.memory_space<vmem>>, %arg3: memref<50x1xf32, #tpu.memory_space<vmem>>, %arg4: memref<30x50xf32, #tpu.memory_space<vmem>>, %arg5: memref<30x1xf32, #tpu.memory_space<vmem>>, %arg6: memref<30x1xf32, #tpu.memory_space<vmem>>, %arg7: memref<1x1xf32, #tpu.memory_space<vmem>>, %arg8: memref<1x128xf32, #tpu.memory_space<vmem>>) attributes {dimension_semantics = [#tpu.dimension_semantics<parallel>], iteration_bounds = array<i64: 1>, scalar_prefetch = 0 : i64, scratch_operands = 0 : i64, tpu.core_type = #tpu.core_type<tc>, window_params = [{transform_indices = @transform_0, window_bounds = array<i64: 3, 128>}, {pipeline_mode = #tpu.pipeline_mode<synchronous>, transform_indices = @transform_1, window_bounds = array<i64: 50, 3>}, {pipeline_mode = #tpu.pipeline_mode<synchronous>, transform_indices = @transform_2, window_bounds = array<i64: 50, 1>}, {pipeline_mode = #tpu.pipeline_mode<synchronous>, transform_indices = @transform_3, window_bounds = array<i64: 30, 50>}, {pipeline_mode = #tpu.pipeline_mode<synchronous>, transform_indices = @transform_4, window_bounds = array<i64: 30, 1>}, {pipeline_mode = #tpu.pipeline_mode<synchronous>, transform_indices = @transform_5, window_bounds = array<i64: 30, 1>}, {pipeline_mode = #tpu.pipeline_mode<synchronous>, transform_indices = @transform_6, window_bounds = array<i64: 1, 1>}, {transform_indices = @transform_7, window_bounds = array<i64: 1, 128>}]} {
    %c0 = arith.constant 0 : index
    %c0_0 = arith.constant 0 : index
    %0 = vector.load %arg1[%c0, %c0_0] : memref<3x128xf32, #tpu.memory_space<vmem>>, vector<3x128xf32>
    %c0_1 = arith.constant 0 : index
    %c0_2 = arith.constant 0 : index
    %1 = vector.load %arg2[%c0_1, %c0_2] : memref<50x3xf32, #tpu.memory_space<vmem>>, vector<50x3xf32>
    %2 = vector.extract_strided_slice %1 {offsets = [0, 0], sizes = [50, 1], strides = [1, 1]} : vector<50x3xf32> to vector<50x1xf32>
    %3 = vector.extract_strided_slice %0 {offsets = [0, 0], sizes = [1, 128], strides = [1, 1]} : vector<3x128xf32> to vector<1x128xf32>
    %4 = vector.broadcast %2 : vector<50x1xf32> to vector<50x128xf32>
    %5 = vector.broadcast %3 : vector<1x128xf32> to vector<50x128xf32>
    %6 = arith.mulf %4, %5 : vector<50x128xf32>
    %7 = vector.extract_strided_slice %1 {offsets = [0, 1], sizes = [50, 1], strides = [1, 1]} : vector<50x3xf32> to vector<50x1xf32>
    %8 = vector.extract_strided_slice %0 {offsets = [1, 0], sizes = [1, 128], strides = [1, 1]} : vector<3x128xf32> to vector<1x128xf32>
    %9 = vector.broadcast %7 : vector<50x1xf32> to vector<50x128xf32>
    %10 = vector.broadcast %8 : vector<1x128xf32> to vector<50x128xf32>
    %11 = arith.mulf %9, %10 : vector<50x128xf32>
    %12 = arith.addf %6, %11 : vector<50x128xf32>
    %13 = vector.extract_strided_slice %1 {offsets = [0, 2], sizes = [50, 1], strides = [1, 1]} : vector<50x3xf32> to vector<50x1xf32>
    %14 = vector.extract_strided_slice %0 {offsets = [2, 0], sizes = [1, 128], strides = [1, 1]} : vector<3x128xf32> to vector<1x128xf32>
    %15 = vector.broadcast %13 : vector<50x1xf32> to vector<50x128xf32>
    %16 = vector.broadcast %14 : vector<1x128xf32> to vector<50x128xf32>
    %17 = arith.mulf %15, %16 : vector<50x128xf32>
    %18 = arith.addf %12, %17 : vector<50x128xf32>
    %c0_3 = arith.constant 0 : index
    %c0_4 = arith.constant 0 : index
    %19 = vector.load %arg3[%c0_3, %c0_4] : memref<50x1xf32, #tpu.memory_space<vmem>>, vector<50x1xf32>
    %20 = vector.broadcast %19 : vector<50x1xf32> to vector<50x128xf32>
    %21 = arith.addf %18, %20 : vector<50x128xf32>
    %cst = arith.constant 0.000000e+00 : f32
    %22 = vector.broadcast %cst : f32 to vector<50x128xf32>
    %23 = arith.maximumf %21, %22 : vector<50x128xf32>
    %c0_5 = arith.constant 0 : index
    %c0_6 = arith.constant 0 : index
    %24 = vector.load %arg4[%c0_5, %c0_6] : memref<30x50xf32, #tpu.memory_space<vmem>>, vector<30x50xf32>
    %cst_7 = arith.constant dense<0.000000e+00> : vector<30x128xf32>
    %25 = tpu.matmul %24, %23, %cst_7 {dimension_numbers = #tpu.dot_dimension_numbers<[1], [0], [0], [1], [0, 0, 1, 1], [], []>} : vector<30x50xf32>, vector<50x128xf32>, vector<30x128xf32> -> vector<30x128xf32>
    %c0_8 = arith.constant 0 : index
    %c0_9 = arith.constant 0 : index
    %26 = vector.load %arg5[%c0_8, %c0_9] : memref<30x1xf32, #tpu.memory_space<vmem>>, vector<30x1xf32>
    %27 = vector.broadcast %26 : vector<30x1xf32> to vector<30x128xf32>
    %28 = arith.addf %25, %27 : vector<30x128xf32>
    %cst_10 = arith.constant 0.000000e+00 : f32
    %29 = vector.broadcast %cst_10 : f32 to vector<30x128xf32>
    %30 = arith.maximumf %28, %29 : vector<30x128xf32>
    %c0_11 = arith.constant 0 : index
    %c0_12 = arith.constant 0 : index
    %31 = vector.load %arg6[%c0_11, %c0_12] : memref<30x1xf32, #tpu.memory_space<vmem>>, vector<30x1xf32>
    %32 = vector.broadcast %31 : vector<30x1xf32> to vector<30x128xf32>
    %33 = arith.mulf %30, %32 : vector<30x128xf32>
    %cst_13 = arith.constant dense<0.000000e+00> : vector<128xf32>
    %34 = vector.multi_reduction <add>, %33, %cst_13 [0] : vector<30x128xf32> to vector<128xf32>
    %35 = vector.shape_cast %34 : vector<128xf32> to vector<1x128xf32>
    %c0_14 = arith.constant 0 : index
    %c0_15 = arith.constant 0 : index
    %36 = vector.load %arg7[%c0_14, %c0_15] : memref<1x1xf32, #tpu.memory_space<vmem>>, vector<1x1xf32>
    %37 = vector.broadcast %36 : vector<1x1xf32> to vector<1x128xf32>
    %38 = arith.addf %35, %37 : vector<1x128xf32>
    %c0_16 = arith.constant 0 : index
    %c0_17 = arith.constant 0 : index
    %39 = vector.load %arg8[%c0_16, %c0_17] : memref<1x128xf32, #tpu.memory_space<vmem>>, vector<1x128xf32>
    tpu.vector_store %arg8[%c0_16, %c0_17], %38 {strides = array<i32>} : memref<1x128xf32, #tpu.memory_space<vmem>>, vector<1x128xf32>,
    return
  }
  func.func @transform_0(%arg0: i32) -> (i32, i32) {
    %c0_i32 = arith.constant 0 : i32
    %c0_i32_0 = arith.constant 0 : i32
    return %c0_i32, %arg0 : i32, i32
  }
  func.func @transform_1(%arg0: i32) -> (i32, i32) {
    %c0_i32 = arith.constant 0 : i32
    %c0_i32_0 = arith.constant 0 : i32
    %c0_i32_1 = arith.constant 0 : i32
    return %c0_i32, %c0_i32_0 : i32, i32
  }
  func.func @transform_2(%arg0: i32) -> (i32, i32) {
    %c0_i32 = arith.constant 0 : i32
    %c0_i32_0 = arith.constant 0 : i32
    %c0_i32_1 = arith.constant 0 : i32
    return %c0_i32, %c0_i32_0 : i32, i32
  }
  func.func @transform_3(%arg0: i32) -> (i32, i32) {
    %c0_i32 = arith.constant 0 : i32
    %c0_i32_0 = arith.constant 0 : i32
    %c0_i32_1 = arith.constant 0 : i32
    return %c0_i32, %c0_i32_0 : i32, i32
  }
  func.func @transform_4(%arg0: i32) -> (i32, i32) {
    %c0_i32 = arith.constant 0 : i32
    %c0_i32_0 = arith.constant 0 : i32
    %c0_i32_1 = arith.constant 0 : i32
    return %c0_i32, %c0_i32_0 : i32, i32
  }
  func.func @transform_5(%arg0: i32) -> (i32, i32) {
    %c0_i32 = arith.constant 0 : i32
    %c0_i32_0 = arith.constant 0 : i32
    %c0_i32_1 = arith.constant 0 : i32
    return %c0_i32, %c0_i32_0 : i32, i32
  }
  func.func @transform_6(%arg0: i32) -> (i32, i32) {
    %c0_i32 = arith.constant 0 : i32
    %c0_i32_0 = arith.constant 0 : i32
    %c0_i32_1 = arith.constant 0 : i32
    return %c0_i32, %c0_i32_0 : i32, i32
  }
  func.func @transform_7(%arg0: i32) -> (i32, i32) {
    %c0_i32 = arith.constant 0 : i32
    %c0_i32_0 = arith.constant 0 : i32
    return %c0_i32, %arg0 : i32, i32
  }
}

</mosaic_0001>

<bundles_post_ra>
// kernel: tpu_custom_call.1
= control target key start
LH: loop header
LB: loop body
LE: loop exit
PB: predicated region body
PF: predicated region fallthrough
CT: control target
= control target key end

     0   :  { %s713_s0 = inlined_call_operand.vmem [shape: f32[3,128], index: 0, kind: input, shape index: {}]   ;;  %s714_s1 = inlined_call_operand.vmem [shape: f32[50,3], index: 1, kind: input, shape index: {}]   ;;  %s715_s2 = inlined_call_operand.vmem [shape: f32[50,1], index: 2, kind: input, shape index: {}]   ;;  %s716_s3 = inlined_call_operand.vmem [shape: f32[30,50], index: 3, kind: input, shape index: {}]   ;;  %s717_s4 = inlined_call_operand.vmem [shape: f32[30,1], index: 4, kind: input, shape index: {}]   ;;  %s718_s5 = inlined_call_operand.vmem [shape: f32[30,1], index: 5, kind: input, shape index: {}]   ;;  %s719_s6 = inlined_call_operand.<no memory space> [shape: f32[1,1], index: 6, kind: input, shape index: {}]   ;;  %s720_s7 = inlined_call_operand.hbm [shape: f32[1,128], index: 7, kind: output, shape index: {}]  }
   0x1   :  { %v12_v0 = vstv %s719_s6 }
   0x2   :  { %13 = vst [vmem:[#allocation2] sm:$0x1] %v12_v0 }
   0x3   :  { %v34_v1 = vld [vmem:[%s714_s1 + $0x20] sm:$0xff]  ;;  %v530_v3 = vmov 1   ;;  %v31_v4 = vld [vmem:[%s714_s1 + $0x8] sm:$0xff]  ;;  %v531_v5 = vmov 2  }
   0x4   :  { %v30_v2 = vld [vmem:[%s714_s1] sm:$0xff]  ;;  %496 = vset.pattern.permute.xlu0 %v530_v3  ;;  %490 = vset.pattern.permute.xlu1 %v530_v3 }
   0x5   :  { %100 = vperm.xlu0 %496, %v34_v1   ;;  %84 = vperm.xlu1 %490, %v30_v2  }
   0x9   :  { %497 = vset.pattern.permute.xlu0 %v531_v5  ;;  %88 = vperm.xlu1 %490, %v31_v4  }
   0xa   :  { %14 = vsyncpa [#allocation4], 0  ;;  %130 = vperm.xlu0 %497, %v30_v2   ;;  %v32_v6 = vld [vmem:[%s714_s1 + $0x10] sm:$0xff]  ;;  %v35_v7 = vld [vmem:[%s714_s1 + $0x28] sm:$0xff]  ;;  %v532_v8 = vmov 0   ;;  %vm259_vm0 = vcmask 408576   ;;  %v72_v35 = vlaneseq }
   0xb   :  { %v33_v9 = vld [vmem:[%s714_s1 + $0x18] sm:$0xff]  ;;  %v176_v10 = vld [vmem:[%s715_s2 + $0x8] sm:$0xff]  ;;  %v175_v11 = vld [vmem:[%s715_s2] sm:$0xff]  ;;  %vm272_vm1 = vcmask 1041408   ;;  %vm395_vm2 = vcmask 1045504  }
   0xc   :  { %v36_v12 = vld [vmem:[%s714_s1 + $0x30] sm:$0x3]  ;;  %v180_v13 = vld [vmem:[%s715_s2 + $0x28] sm:$0xff]  ;;  %v238_v16 = vld [vmem:[%s717_s4 + $0x18] sm:$0x3f]  ;;  %v653_v37 = vshrl.u32 %v72_v35, 7 }
   0xd   :  { %491 = vset.pattern.permute.xlu1 %v531_v5  ;;  %v181_v14 = vld [vmem:[%s715_s2 + $0x30] sm:$0x3]  ;;  %v236_v15 = vld [vmem:[%s717_s4 + $0x8] sm:$0xff]  ;;  %v368_v19 = vld [vmem:[%s718_s5 + $0x18] sm:$0x3f] }
   0xe   :  { %138 = vperm.xlu0 %497, %v32_v6   ;;  %134 = vperm.xlu1 %491, %v31_v4   ;;  %v366_v17 = vld [vmem:[%s718_s5 + $0x8] sm:$0xff]  ;;  %v177_v18 = vld [vmem:[%s715_s2 + $0x10] sm:$0xff]  ;;  %v178_v20 = vld [vmem:[%s715_s2 + $0x18] sm:$0xff]  ;;  %v74_v39 = vsub.s32 0, %v653_v37  ;;  %v113_v40 = vsub.s32 1, %v653_v37  ;;  %v159_v44 = vsub.s32 2, %v653_v37 }
   0xf   :  { %v179_v21 = vld [vmem:[%s715_s2 + $0x20] sm:$0xff]  ;;  %v233_v23 = vld [vmem:[%s716_s3 + $0x10] sm:$0xff] }
  0x10   :  { %v231_v22 = vld [vmem:[%s716_s3] sm:$0xff]  ;;  %463 = vmatprep.mubr.msk.f32.mxu1 %vm259_vm0, %v233_v23  ;;  %v237_v25 = vld [vmem:[%s717_s4 + $0x10] sm:$0xff] }
  0x11   :  { %460 = vmatprep.mubr.msk.f32.mxu0 %vm259_vm0, %v231_v22  ;;  %v235_v24 = vld [vmem:[%s717_s4] sm:$0xff]  ;;  %v367_v27 = vld [vmem:[%s718_s5 + $0x10] sm:$0xff] }
  0x12   :  { %150 = vperm.xlu0 %497, %v35_v7   ;;  %492 = vset.pattern.permute.xlu1 %v532_v8  ;;  %v365_v26 = vld [vmem:[%s718_s5] sm:$0xff] }
  0x13   :  { %49 = vperm.xlu1 %492, %v32_v6   ;;  %v404_v28 = vld [vmem:[#allocation2] sm:$0x1] }
  0x14   :  { %v29_v42 = vld [vmem:[%s713_s0] sm:$0x7] }
  0x15   :  { %v663_v45 = vrot.slane %v29_v42, %v74_v39  ;;  %v665_v46 = vrot.slane %v29_v42, %v113_v40  ;;  %v669_v51 = vrot.slane %v29_v42, %v159_v44 }
  0x16   :  { %500 = vset.pattern.permute.xlu0 %v532_v8 }
  0x17   :  { %39 = vperm.xlu0 %500, %v30_v2   ;;  %493 = vset.pattern.permute.xlu1 %v530_v3 }
  0x18   :  { %92 = vperm.xlu1 %493, %v32_v6  }
  0x1b   :  { %44 = vperm.xlu0 %500, %v31_v4  }
  0x1c   :  { %96 = vperm.xlu1 %493, %v33_v9  }
  0x1f   :  { %54 = vperm.xlu0 %500, %v33_v9  }
  0x20   :  { %494 = vset.pattern.permute.xlu1 %v531_v5 }
  0x21   :  { %142 = vperm.xlu1 %494, %v33_v9  }
  0x23   :  { %189 = vperm.xlu0 %500, %v176_v10  }
  0x25   :  { %495 = vset.pattern.permute.xlu1 %v532_v8 }
  0x26   :  { %184 = vperm.xlu1 %495, %v175_v11  }
  0x27   :  { %69 = vperm.xlu0 %500, %v36_v12  }
  0x2a   :  { %59 = vperm.xlu1 %495, %v34_v1  }
  0x2b   :  { %209 = vperm.xlu0 %500, %v180_v13  }
  0x2e   :  { %64 = vperm.xlu1 %495, %v35_v7  }
  0x2f   :  { %214 = vperm.xlu0 %500, %v181_v14  }
  0x32   :  { %498 = vset.pattern.permute.xlu1 %v530_v3 }
  0x33   :  { %246 = vperm.xlu0 %500, %v236_v15   ;;  %104 = vperm.xlu1 %498, %v35_v7  }
  0x37   :  { %256 = vperm.xlu0 %500, %v238_v16   ;;  %499 = vset.pattern.permute.xlu1 %v531_v5 }
  0x38   :  { %146 = vperm.xlu1 %499, %v34_v1  }
  0x3b   :  { %376 = vperm.xlu0 %500, %v366_v17  }
  0x3c   :  { %501 = vset.pattern.permute.xlu1 %v532_v8 }
  0x3d   :  { %194 = vperm.xlu1 %501, %v177_v18  }
  0x3f   :  { %386 = vperm.xlu0 %500, %v368_v19  }
  0x41   :  { %199 = vperm.xlu1 %501, %v178_v20  }
  0x45   :  { %502 = vset.pattern.permute.xlu1 %v530_v3 }
  0x46   :  { %108 = vperm.xlu1 %502, %v36_v12  }
  0x4a   :  { %503 = vset.pattern.permute.xlu1 %v532_v8 }
  0x4b   :  { %204 = vperm.xlu1 %503, %v179_v21  }
  0x4f   :  { %504 = vset.pattern.permute.xlu1 %v531_v5 }
  0x50   :  { %154 = vperm.xlu1 %504, %v36_v12  }
  0x54   :  { %505 = vset.pattern.permute.xlu1 %v532_v8 }
  0x55   :  { %241 = vperm.xlu1 %505, %v235_v24  }
  0x59   :  { %251 = vperm.xlu1 %505, %v237_v25  }
  0x5d   :  { %371 = vperm.xlu1 %505, %v365_v26  }
  0x61   :  { %381 = vperm.xlu1 %505, %v367_v27  }
  0x65   :  { %407 = vperm.xlu1 %505, %v404_v28  }
  0x84   :  { %v85_v29 = vpop.permute.xlu1 %84  ;;  %v651_v30 = vpop.permute.xlu0 %100 }
  0x85   :  { %v115_v53 = vmul.f32 %v665_v46, %v85_v29 }
  0x88   :  { %v89_v31 = vpop.permute.xlu1 %88 }
  0x89   :  { %v131_v32 = vpop.permute.xlu0 %130  ;;  %v116_v50 = vmul.f32 %v665_v46, %v89_v31 }
  0x8a   :  { %v161_v56 = vmul.f32 %v669_v51, %v131_v32  ;;  %v119_v32 = vmul.f32 %v665_v46, %v651_v30 }
  0x8d   :  { %v135_v33 = vpop.permute.xlu1 %134  ;;  %v139_v34 = vpop.permute.xlu0 %138 }
  0x8e   :  { %v162_v57 = vmul.f32 %v669_v51, %v135_v33  ;;  %v163_v12 = vmul.f32 %v669_v51, %v139_v34 }
  0x91   :  { %v151_v36 = vpop.permute.xlu0 %150 }
  0x92   :  { %v50_v38 = vpop.permute.xlu1 %49  ;;  %v166_v27 = vmul.f32 %v669_v51, %v151_v36 }
  0x93   :  { %v78_v9 = vmul.f32 %v663_v45, %v50_v38 }
  0x96   :  { %v40_v41 = vpop.permute.xlu0 %39 }
  0x97   :  { %v93_v43 = vpop.permute.xlu1 %92  ;;  %v76_v52 = vmul.f32 %v663_v45, %v40_v41 }
  0x98   :  { %v117_v8 = vmul.f32 %v665_v46, %v93_v43 }
  0x99   :  { %v122_v58 = vadd.f32 %v115_v53, %v76_v52 }
  0x9a   :  { %v45_v47 = vpop.permute.xlu0 %44  ;;  %v124_v13 = vadd.f32 %v117_v8, %v78_v9 }
  0x9b   :  { %v77_v48 = vmul.f32 %v663_v45, %v45_v47  ;;  %v97_v49 = vpop.permute.xlu1 %96  ;;  %v168_v63 = vadd.f32 %v161_v56, %v122_v58 }
  0x9c   :  { %v118_v14 = vmul.f32 %v665_v46, %v97_v49  ;;  %v170_v19 = vadd.f32 %v163_v12, %v124_v13 }
  0x9d   :  { %v123_v54 = vadd.f32 %v116_v50, %v77_v48 }
  0x9e   :  { %v55_v55 = vpop.permute.xlu0 %54 }
  0x9f   :  { %v169_v61 = vadd.f32 %v162_v57, %v123_v54  ;;  %v79_v10 = vmul.f32 %v663_v45, %v55_v55 }
  0xa0   :  { %v143_v59 = vpop.permute.xlu1 %142 }
  0xa1   :  { %v125_v15 = vadd.f32 %v118_v14, %v79_v10  ;;  %v164_v16 = vmul.f32 %v669_v51, %v143_v59 }
  0xa2   :  { %v190_v60 = vpop.permute.xlu0 %189 }
  0xa3   :  { %v218_v62 = vadd.f32 %v190_v60, %v169_v61  ;;  %v171_v22 = vadd.f32 %v164_v16, %v125_v15 }
  0xa5   :  { %v185_v0 = vpop.permute.xlu1 %184  ;;  %v225_v2 = vmax.f32 %v218_v62, 0.0 }
  0xa6   :  { %v217_v1 = vadd.f32 %v185_v0, %v168_v63  ;;  %v70_v26 = vpop.permute.xlu0 %69 }
  0xa7   :  { %v82_v30 = vmul.f32 %v663_v45, %v70_v26 }
  0xa8   :  { %v224_v3 = vmax.f32 %v217_v1, 0.0 }
  0xa9   :  { %v60_v4 = vpop.permute.xlu1 %59 }
  0xaa   :  { %v466_v5 = vpack.c.bf16 %v225_v2, %v224_v3  ;;  %v80_v28 = vmul.f32 %v663_v45, %v60_v4  ;;  %v210_v41 = vpop.permute.xlu0 %209 }
  0xac   :  { %467 = vmatprep.subr.bf16.mxu0 %v466_v5  ;;  %478 = vmatprep.subr.bf16.mxu1 %v466_v5  ;;  %v126_v40 = vadd.f32 %v119_v32, %v80_v28 }
  0xad   :  { %v65_v6 = vpop.permute.xlu1 %64  ;;  %469 = vmatpush3.bf16.msra.mxu0 %v466_v5  ;;  %482 = vmatpush3.bf16.msra.mxu1 %v466_v5 }
  0xae   :  { %v81_v20 = vmul.f32 %v663_v45, %v65_v6  ;;  %v215_v56 = vpop.permute.xlu0 %214  ;;  %v234_v45 = vld [vmem:[%s716_s3 + $0x18] sm:$0x3f] }
  0xb2   :  { %v105_v7 = vpop.permute.xlu1 %104 }
  0xb3   :  { %v120_v18 = vmul.f32 %v665_v46, %v105_v7 }
  0xb5   :  { %v127_v24 = vadd.f32 %v120_v18, %v81_v20 }
  0xb7   :  { %v147_v11 = vpop.permute.xlu1 %146  ;;  %v173_v33 = vadd.f32 %v166_v27, %v127_v24 }
  0xb8   :  { %v165_v34 = vmul.f32 %v669_v51, %v147_v11 }
  0xb9   :  { %v222_v36 = vadd.f32 %v210_v41, %v173_v33 }
  0xba   :  { %v172_v42 = vadd.f32 %v165_v34, %v126_v40 }
  0xbb   :  { %v229_v49 = vmax.f32 %v222_v36, 0.0 }
  0xbc   :  { %v195_v17 = vpop.permute.xlu1 %194 }
  0xbd   :  { %v219_v21 = vadd.f32 %v195_v17, %v170_v19 }
  0xbf   :  { %v226_v29 = vmax.f32 %v219_v21, 0.0 }
  0xc0   :  { %v200_v23 = vpop.permute.xlu1 %199 }
  0xc1   :  { %v220_v25 = vadd.f32 %v200_v23, %v171_v22 }
  0xc3   :  { %v227_v31 = vmax.f32 %v220_v25, 0.0 }
  0xc5   :  { %v470_v35 = vpack.c.bf16 %v227_v31, %v226_v29  ;;  %v109_v38 = vpop.permute.xlu1 %108 }
  0xc6   :  { %v121_v47 = vmul.f32 %v665_v46, %v109_v38  ;;  %v232_v46 = vld [vmem:[%s716_s3 + $0x8] sm:$0xff]  ;;  %s533_s3 = smov [#allocation3]  }
  0xc7   :  { %471 = vmatprep.subr.bf16.mxu0 %v470_v35  ;;  %479 = vmatprep.subr.bf16.mxu1 %v470_v35  ;;  %s422_s26 = sshll.u32 %s533_s3, 4  ;;  %s423_s26 = int_to_ptr.vmem [resolvable:$true] %s422_s26 }
  0xc8   :  { %473 = vmatpush3.bf16.msra.mxu0 %v470_v35  ;;  %483 = vmatpush3.bf16.msra.mxu1 %v470_v35  ;;  %v128_v53 = vadd.f32 %v121_v47, %v82_v30  ;;  %s506_s27 = scalar_lea.vmem %s423_s26, 16  ;;  %s510_s28 = scalar_lea.vmem %s423_s26, 32 }
  0xc9   :  { %p507_p0 = scmp.ne.s32.totalorder %s423_s26, %s506_s27  ;;  %p511_p1 = scmp.lt.s32.totalorder %s423_s26, %s423_s26 }
  0xca   :  { %v205_v43 = vpop.permute.xlu1 %204  ;;  %p512_p2 = scmp.lt.s32.totalorder %s510_s28, %s506_s27 }
  0xcb   :  { %v221_v44 = vadd.f32 %v205_v43, %v172_v42 }
  0xcc   :  { %p513_p3 = por %p512_p2, %p511_p1 }
  0xcd   :  { %v228_v48 = vmax.f32 %v221_v44, 0.0 }
  0xce   :  { %p514_p4 = pnand %p513_p3, %p507_p0 }
  0xcf   :  { %v474_v50 = vpack.c.bf16 %v229_v49, %v228_v48  ;;  %v155_v52 = vpop.permute.xlu1 %154 }
  0xd0   :  { %v167_v54 = vmul.f32 %v669_v51, %v155_v52  ;;  %v247_v51 = vpop.permute.xlu0 %246 }
  0xd1   :  { %475 = vmatprep.subr.bf16.mxu0 %v474_v50  ;;  %480 = vmatprep.subr.bf16.mxu1 %v474_v50 }
  0xd2   :  { %v174_v55 = vadd.f32 %v167_v54, %v128_v53  ;;  %477 = vmatpush3.bf16.msra.mxu0 %v474_v50  ;;  %484 = vmatpush3.bf16.msra.mxu1 %v474_v50 }
  0xd4   :  { %v223_v57 = vadd.f32 %v215_v56, %v174_v55  ;;  %v242_v59 = vpop.permute.xlu1 %241  ;;  %v257_v60 = vpop.permute.xlu0 %256 }
  0xd6   :  { %v230_v58 = vmax.f32 %v223_v57, 0.0 }
  0xd8   :  { %458 = vmatprep.subr.msk.mxu0 %vm272_vm1, %v230_v58  ;;  %481 = vmatprep.subr.msk.mxu1 %vm272_vm1, %v230_v58  ;;  %v252_v61 = vpop.permute.xlu1 %251  ;;  %v377_v62 = vpop.permute.xlu0 %376 }
  0xd9   :  { %459 = vmatpush3.msk.msra.mxu0 %vm272_vm1, %v230_v58  ;;  %485 = vmatpush3.msk.msra.mxu1 %vm272_vm1, %v230_v58 }
  0xda   :  { %461 = vmatmul.mubr.msk.f32.vlgmr.msra.gmra.mrb[0].mxu0 %vm259_vm0, %v232_v46  ;;  %464 = vmatmul.mubr.msk.f32.vlgmr.msra.gmra.mrb[0].mxu1 %vm259_vm0, %v234_v45 }
  0xdc   :  { %v372_v63 = vpop.permute.xlu1 %371  ;;  %v387_v13 = vpop.permute.xlu0 %386 }
  0xe0   :  { %v382_v15 = vpop.permute.xlu1 %381 }
  0xe4   :  { %v408_v26 = vpop.permute.xlu1 %407 }
  0xe5   :  { %v413_v28 = vrot.slane %v408_v26, %v74_v39 }
 0x1ad   :  { %v462_v0 = vpop.f32.mrb[0].mxu0  ;;  %v465_v1 = vpop.f32.mrb[0].mxu1 }
 0x1ae   :  { %v348_v2 = vadd.f32 %v462_v0, %v247_v51  ;;  %v358_v3 = vadd.f32 %v465_v1, %v257_v60  ;;  %v342_v4 = vpop.f32.mrb[1].mxu0  ;;  %v352_v5 = vpop.f32.mrb[1].mxu1 }
 0x1af   :  { %v343_v6 = vadd.f32 %v342_v4, %v242_v59  ;;  %v353_v7 = vadd.f32 %v352_v5, %v252_v61 }
 0x1b0   :  { %v362_v8 = vmax.f32 %v348_v2, 0.0  ;;  %v364_v9 = vmax.f32 %v358_v3, 0.0 }
 0x1b1   :  { %v361_v10 = vmax.f32 %v343_v6, 0.0  ;;  %v363_v11 = vmax.f32 %v353_v7, 0.0 }
 0x1b2   :  { %v390_v12 = vmul.f32 %v377_v62, %v362_v8  ;;  %v392_v16 = vmul.f32 %v387_v13, %v364_v9 }
 0x1b3   :  { %v389_v14 = vmul.f32 %v372_v63, %v361_v10  ;;  %v391_v18 = vmul.f32 %v382_v15, %v363_v11 }
 0x1b4   :  { %v396_v20 = vsel %vm395_vm2, %v392_v16, 0.0 }
 0x1b5   :  { %v393_v17 = vadd.f32 %v390_v12, %v389_v14 }
 0x1b7   :  { %v394_v19 = vadd.f32 %v393_v17, %v391_v18 }
 0x1b9   :  { %v397_v21 = vadd.f32 %v396_v20, %v394_v19 }
 0x1bb   :  { %v398_v22 = vrot.slane %v397_v21, 4 }
 0x1bd   :  { %v399_v23 = vadd.f32 %v398_v22, %v397_v21 }
 0x1bf   :  { %v400_v24 = vrot.slane %v399_v23, 2 }
 0x1c1   :  { %v401_v25 = vadd.f32 %v400_v24, %v399_v23 }
 0x1c3   :  { %v402_v27 = vrot.slane %v401_v25, 1 }
 0x1c5   :  { %v403_v29 = vadd.f32 %v402_v27, %v401_v25 }
 0x1c7   :  { %v414_v31 = vadd.f32 %v413_v28, %v403_v29 }
 0x1c9   :  { %415 = vst [vmem:[#allocation3] sm:$0x1] %v414_v31 }
 0x1ca   :  { %517 = shalt.err (!%p514_p4)
}
 0x1cb   :  { %s518_s8 = scalar_lea.hbm %s720_s7, 16 }
 0x1cc   :  { %p519_p5 = scmp.ne.s32.totalorder %s720_s7, %s518_s8  ;;  %p522_p6 = scmp.lt.u32.totalorder %s518_s8, %s720_s7 }
 0x1ce   :  { %p524_p7 = pnand %p522_p6, %p519_p5 }
 0x1d0   :  { %527 = shalt.err (!%p524_p7)
}
 0x1d1   :  { %425 = dma.vmem_to_hbm [thread:$0]  %s423_s26, 16, %s720_s7, [#allocation4]  }
 0x1d2   :  { %528 = dma.done.wait [#allocation4], 16  }
 0x1d3   :  { %529 = vsyncadd [#allocation4], 4294967280 }
 0x1d4   :  { %429 = vsyncpa [#allocation4], 1 }

</bundles_post_ra>
